<compile_context>
chip_gen: v5e
topology: v5e:2x2
jax: 0.10.0
libtpu: 0.0.40
codegen_flags: <defaults>
</compile_context>

<pallas_src>
import functools

import jax
import jax.numpy as jnp
from jax.experimental import pallas as pl
from jax.experimental.pallas import tpu as pltpu

_LANE = 128          # lane width of a vreg
_MAX_TR = 1024       # row tile: 1024 x 128 x 4B = 512 KiB per block per array


# ----------------------------------------------------------------------------
# In-kernel mask generation (counter-based hash, integer threshold compare)
# ----------------------------------------------------------------------------
def _mix32(x):
    """lowbias32-style 32-bit mixer (pure VPU integer ops)."""
    x = x ^ (x >> jnp.uint32(16))
    x = x * jnp.uint32(0x7FEB352D)
    x = x ^ (x >> jnp.uint32(15))
    x = x * jnp.uint32(0x846CA68B)
    x = x ^ (x >> jnp.uint32(16))
    return x


def _block_mask(seed_ref, block_shape, tr, p):
    """Inverted-dropout mask for the current (tr, 128) block."""
    # integer drop threshold: P(h < thresh) ~= p
    thresh = jnp.uint32(min(int(p * 4294967296.0), 0xFFFFFFFF))
    scale = jnp.float32(1.0 / (1.0 - p))

    base_row = (pl.program_id(0) * tr).astype(jnp.uint32)
    rows = jax.lax.broadcasted_iota(jnp.uint32, block_shape, 0) + base_row
    cols = jax.lax.broadcasted_iota(jnp.uint32, block_shape, 1)
    idx = rows * jnp.uint32(block_shape[1]) + cols      # global element index

    seed = seed_ref[0].astype(jnp.uint32) * jnp.uint32(0x9E3779B9)
    h = _mix32(_mix32(idx ^ seed))                      # two rounds, cheap & hidden under DMA

    keep = h >= thresh
    return jnp.where(keep, scale, jnp.float32(0.0))


def _complex_dropout_kernel(p, tr, seed_ref, re_ref, im_ref, ore_ref, oim_ref):
    mask = _block_mask(seed_ref, re_ref.shape, tr, p)
    ore_ref[...] = re_ref[...] * mask                   # same mask on both parts
    oim_ref[...] = im_ref[...] * mask


def _real_dropout_kernel(p, tr, seed_ref, x_ref, o_ref):
    mask = _block_mask(seed_ref, x_ref.shape, tr, p)
    o_ref[...] = x_ref[...] * mask


# ----------------------------------------------------------------------------
# Wrappers
# ----------------------------------------------------------------------------
def _plan_rows(n_elems):
    """Choose padded row count R and row tile TR (R % TR == 0, TR % 8 == 0)."""
    r = pl.cdiv(n_elems, _LANE)
    r = ((r + 7) // 8) * 8                  # sublane align
    tr = min(_MAX_TR, r)
    r = ((r + tr - 1) // tr) * tr           # pad rows to a multiple of the tile
    return r, tr


def _to_slab(x, r):
    flat = x.reshape(-1).astype(jnp.float32)
    pad = r * _LANE - flat.size
    if pad:
        flat = jnp.pad(flat, (0, pad))
    return flat.reshape(r, _LANE)


def _from_slab(slab, n, shape, dtype):
    return slab.reshape(-1)[:n].reshape(shape).astype(dtype)


def complex_dropout(real, imag, *, p: float, seed: int, training: bool = True):
    """Pallas ComplexDropout.forward for a complex input given as (real, imag)."""
    assert real.shape == imag.shape
    if (not training) or p == 0.0:
        return real, imag
    if p >= 1.0:
        return jnp.zeros_like(real), jnp.zeros_like(imag)

    shape, n = real.shape, real.size
    r, tr = _plan_rows(n)
    re2 = _to_slab(real, r)
    im2 = _to_slab(imag, r)
    seed_arr = jnp.array([int(seed)], dtype=jnp.int32)

    kernel = functools.partial(_complex_dropout_kernel, float(p), tr)
    blk = lambda: pl.BlockSpec((tr, _LANE), lambda i, s: (i, 0))

    out_re, out_im = pl.pallas_call(
        kernel,
        out_shape=(
            jax.ShapeDtypeStruct((r, _LANE), jnp.float32),
            jax.ShapeDtypeStruct((r, _LANE), jnp.float32),
        ),
        grid_spec=pltpu.PrefetchScalarGridSpec(
            num_scalar_prefetch=1,
            grid=(r // tr,),
            in_specs=[blk(), blk()],
            out_specs=[blk(), blk()],
        ),
        compiler_params=pltpu.CompilerParams(
            dimension_semantics=("parallel",),
        ),
        cost_estimate=pl.CostEstimate(
            flops=3 * n, transcendentals=0, bytes_accessed=16 * n),
    )(seed_arr, re2, im2)

    return (_from_slab(out_re, n, shape, real.dtype),
            _from_slab(out_im, n, shape, imag.dtype))


def real_dropout(x, *, p: float, seed: int, training: bool = True):
    """Non-complex branch: plain inverted dropout (dedicated single-stream kernel)."""
    if (not training) or p == 0.0:
        return x
    if p >= 1.0:
        return jnp.zeros_like(x)

    shape, n = x.shape, x.size
    r, tr = _plan_rows(n)
    x2 = _to_slab(x, r)
    seed_arr = jnp.array([int(seed)], dtype=jnp.int32)

    kernel = functools.partial(_real_dropout_kernel, float(p), tr)
    blk = lambda: pl.BlockSpec((tr, _LANE), lambda i, s: (i, 0))

    out = pl.pallas_call(
        kernel,
        out_shape=jax.ShapeDtypeStruct((r, _LANE), jnp.float32),
        grid_spec=pltpu.PrefetchScalarGridSpec(
            num_scalar_prefetch=1,
            grid=(r // tr,),
            in_specs=[blk()],
            out_specs=blk(),
        ),
        compiler_params=pltpu.CompilerParams(
            dimension_semantics=("parallel",),
        ),
        cost_estimate=pl.CostEstimate(
            flops=2 * n, transcendentals=0, bytes_accessed=8 * n),
    )(seed_arr, x2)

    return _from_slab(out, n, shape, x.dtype)


# ----------------------------------------------------------------------------
# Demo / sanity checks
# ----------------------------------------------------------------------------
if __name__ == "__main__":
    key = jax.random.PRNGKey(0)
    k_re, k_im, k_x = jax.random.split(key, 3)

    B, C, H, W = 2, 4, 16, 16                 # NCHW, like the PyTorch module
    x_real = jax.random.normal(k_re, (B, C, H, W), dtype=jnp.float32)
    x_imag = jax.random.normal(k_im, (B, C, H, W), dtype=jnp.float32)
    p = 0.3
    scale = 1.0 / (1.0 - p)

    # --- complex branch ------------------------------------------------------
    out_re, out_im = complex_dropout(x_real, x_imag, p=p, seed=1234,
                                     training=True)
    out_re = jax.block_until_ready(out_re)
    out_im = jax.block_until_ready(out_im)

    dropped_re = (out_re == 0.0)
    dropped_im = (out_im == 0.0)
    assert bool(jnp.all(dropped_re == dropped_im)), "mask differs re vs im"
    keep = ~dropped_re
    assert bool(jnp.allclose(out_re[keep], x_real[keep] * scale, rtol=1e-6))
    assert bool(jnp.allclose(out_im[keep], x_imag[keep] * scale, rtol=1e-6))
    frac_dropped = float(jnp.mean(dropped_re.astype(jnp.float32)))
    assert 0.1 < frac_dropped < 0.5, f"drop fraction {frac_dropped} far from p={p}"

    # --- eval mode is identity ----------------------------------------------
    ev_re, ev_im = complex_dropout(x_real, x_imag, p=p, seed=1234,
                                   training=False)
    assert bool(jnp.all(ev_re == x_real)) and bool(jnp.all(ev_im == x_imag))

    # --- real branch (exercises padding path: 105 elems -> padded slab) -----
    xr = jax.random.normal(k_x, (3, 5, 7), dtype=jnp.float32)
    out_x = jax.block_until_ready(real_dropout(xr, p=p, seed=77, training=True))
    ok = (out_x == 0.0) | jnp.isclose(out_x, xr * scale, rtol=1e-6)
    assert bool(jnp.all(ok))
    assert out_x.shape == xr.shape

    print("KERNEL_OK")
</pallas_src>

<mosaic_0001>
module attributes {stable_mosaic.version = 11 : i64} {
  func.func @_complex_dropout_kernel(%arg0: i32, %arg1: memref<1xi32, #tpu.memory_space<smem>>, %arg2: memref<16x128xf32, #tpu.memory_space<vmem>>, %arg3: memref<16x128xf32, #tpu.memory_space<vmem>>, %arg4: memref<16x128xf32, #tpu.memory_space<vmem>>, %arg5: memref<16x128xf32, #tpu.memory_space<vmem>>) attributes {dimension_semantics = [#tpu.dimension_semantics<parallel>], iteration_bounds = array<i64: 1>, scalar_prefetch = 1 : i64, scratch_operands = 0 : i64, tpu.core_type = #tpu.core_type<tc>, window_params = [{transform_indices = @transform_0, window_bounds = array<i64: 16, 128>}, {transform_indices = @transform_1, window_bounds = array<i64: 16, 128>}, {transform_indices = @transform_2, window_bounds = array<i64: 16, 128>}, {transform_indices = @transform_3, window_bounds = array<i64: 16, 128>}]} {
    %c16_i32 = arith.constant 16 : i32
    %0 = arith.muli %arg0, %c16_i32 : i32
    %1 = tpu.iota {dimensions = array<i32: 0>} : vector<16x128xi32>
    %2 = vector.broadcast %0 : i32 to vector<16x128xi32>
    %3 = arith.addi %1, %2 : vector<16x128xi32>
    %4 = tpu.iota {dimensions = array<i32: 1>} : vector<16x128xi32>
    %c128_i32 = arith.constant 128 : i32
    %5 = vector.broadcast %c128_i32 : i32 to vector<16x128xi32>
    %6 = arith.muli %3, %5 : vector<16x128xi32>
    %7 = arith.addi %6, %4 : vector<16x128xi32>
    %c0 = arith.constant 0 : index
    %8 = memref.load %arg1[%c0] : memref<1xi32, #tpu.memory_space<smem>>
    %c-1640531527_i32 = arith.constant -1640531527 : i32
    %9 = arith.muli %8, %c-1640531527_i32 : i32
    %10 = vector.broadcast %9 : i32 to vector<16x128xi32>
    %11 = arith.xori %7, %10 : vector<16x128xi32>
    %c16_i32_0 = arith.constant 16 : i32
    %12 = vector.broadcast %c16_i32_0 : i32 to vector<16x128xi32>
    %13 = arith.shrui %11, %12 : vector<16x128xi32>
    %14 = arith.xori %11, %13 : vector<16x128xi32>
    %c2146121005_i32 = arith.constant 2146121005 : i32
    %15 = vector.broadcast %c2146121005_i32 : i32 to vector<16x128xi32>
    %16 = arith.muli %14, %15 : vector<16x128xi32>
    %c15_i32 = arith.constant 15 : i32
    %17 = vector.broadcast %c15_i32 : i32 to vector<16x128xi32>
    %18 = arith.shrui %16, %17 : vector<16x128xi32>
    %19 = arith.xori %16, %18 : vector<16x128xi32>
    %c-2073254261_i32 = arith.constant -2073254261 : i32
    %20 = vector.broadcast %c-2073254261_i32 : i32 to vector<16x128xi32>
    %21 = arith.muli %19, %20 : vector<16x128xi32>
    %c16_i32_1 = arith.constant 16 : i32
    %22 = vector.broadcast %c16_i32_1 : i32 to vector<16x128xi32>
    %23 = arith.shrui %21, %22 : vector<16x128xi32>
    %24 = arith.xori %21, %23 : vector<16x128xi32>
    %c16_i32_2 = arith.constant 16 : i32
    %25 = vector.broadcast %c16_i32_2 : i32 to vector<16x128xi32>
    %26 = arith.shrui %24, %25 : vector<16x128xi32>
    %27 = arith.xori %24, %26 : vector<16x128xi32>
    %c2146121005_i32_3 = arith.constant 2146121005 : i32
    %28 = vector.broadcast %c2146121005_i32_3 : i32 to vector<16x128xi32>
    %29 = arith.muli %27, %28 : vector<16x128xi32>
    %c15_i32_4 = arith.constant 15 : i32
    %30 = vector.broadcast %c15_i32_4 : i32 to vector<16x128xi32>
    %31 = arith.shrui %29, %30 : vector<16x128xi32>
    %32 = arith.xori %29, %31 : vector<16x128xi32>
    %c-2073254261_i32_5 = arith.constant -2073254261 : i32
    %33 = vector.broadcast %c-2073254261_i32_5 : i32 to vector<16x128xi32>
    %34 = arith.muli %32, %33 : vector<16x128xi32>
    %c16_i32_6 = arith.constant 16 : i32
    %35 = vector.broadcast %c16_i32_6 : i32 to vector<16x128xi32>
    %36 = arith.shrui %34, %35 : vector<16x128xi32>
    %37 = arith.xori %34, %36 : vector<16x128xi32>
    %c1288490188_i32 = arith.constant 1288490188 : i32
    %38 = vector.broadcast %c1288490188_i32 : i32 to vector<16x128xi32>
    %39 = arith.cmpi uge, %37, %38 : vector<16x128xi32>
    %cst = arith.constant 1.42857146 : f32
    %cst_7 = arith.constant 0.000000e+00 : f32
    %40 = vector.broadcast %cst : f32 to vector<16x128xf32>
    %41 = vector.broadcast %cst_7 : f32 to vector<16x128xf32>
    %42 = arith.select %39, %40, %41 : vector<16x128xi1>, vector<16x128xf32>
    %c0_8 = arith.constant 0 : index
    %c0_9 = arith.constant 0 : index
    %43 = vector.load %arg2[%c0_8, %c0_9] : memref<16x128xf32, #tpu.memory_space<vmem>>, vector<16x128xf32>
    %44 = arith.mulf %43, %42 : vector<16x128xf32>
    %c0_10 = arith.constant 0 : index
    %c0_11 = arith.constant 0 : index
    %45 = vector.load %arg4[%c0_10, %c0_11] : memref<16x128xf32, #tpu.memory_space<vmem>>, vector<16x128xf32>
    tpu.vector_store %arg4[%c0_10, %c0_11], %44 {strides = array<i32>} : memref<16x128xf32, #tpu.memory_space<vmem>>, vector<16x128xf32>,
    %c0_12 = arith.constant 0 : index
    %c0_13 = arith.constant 0 : index
    %46 = vector.load %arg3[%c0_12, %c0_13] : memref<16x128xf32, #tpu.memory_space<vmem>>, vector<16x128xf32>
    %47 = arith.mulf %46, %42 : vector<16x128xf32>
    %c0_14 = arith.constant 0 : index
    %c0_15 = arith.constant 0 : index
    %48 = vector.load %arg5[%c0_14, %c0_15] : memref<16x128xf32, #tpu.memory_space<vmem>>, vector<16x128xf32>
    tpu.vector_store %arg5[%c0_14, %c0_15], %47 {strides = array<i32>} : memref<16x128xf32, #tpu.memory_space<vmem>>, vector<16x128xf32>,
    return
  }
  func.func @transform_0(%arg0: i32, %arg1: memref<1xi32, #tpu.memory_space<smem>>) -> (i32, i32) {
    %c0_i32 = arith.constant 0 : i32
    %c0_i32_0 = arith.constant 0 : i32
    return %arg0, %c0_i32 : i32, i32
  }
  func.func @transform_1(%arg0: i32, %arg1: memref<1xi32, #tpu.memory_space<smem>>) -> (i32, i32) {
    %c0_i32 = arith.constant 0 : i32
    %c0_i32_0 = arith.constant 0 : i32
    return %arg0, %c0_i32 : i32, i32
  }
  func.func @transform_2(%arg0: i32, %arg1: memref<1xi32, #tpu.memory_space<smem>>) -> (i32, i32) {
    %c0_i32 = arith.constant 0 : i32
    %c0_i32_0 = arith.constant 0 : i32
    return %arg0, %c0_i32 : i32, i32
  }
  func.func @transform_3(%arg0: i32, %arg1: memref<1xi32, #tpu.memory_space<smem>>) -> (i32, i32) {
    %c0_i32 = arith.constant 0 : i32
    %c0_i32_0 = arith.constant 0 : i32
    return %arg0, %c0_i32 : i32, i32
  }
}

</mosaic_0001>

<bundles_post_ra>
// kernel: tpu_custom_call.1
= control target key start
LH: loop header
LB: loop body
LE: loop exit
PB: predicated region body
PF: predicated region fallthrough
CT: control target
= control target key end

     0   :  { %11 = vsyncpa [#allocation5], 0  ;;  %s329_s0 = inlined_call_operand.<no memory space> [shape: s32[1], index: 0, kind: input, shape index: {}]   ;;  %s330_s1 = inlined_call_operand.hbm [shape: f32[16,128], index: 1, kind: input, shape index: {}]   ;;  %s331_s2 = inlined_call_operand.hbm [shape: f32[16,128], index: 2, kind: input, shape index: {}]   ;;  %s332_s3 = inlined_call_operand.hbm [shape: f32[16,128], index: 3, kind: output, shape index: {0}]   ;;  %s333_s4 = inlined_call_operand.hbm [shape: f32[16,128], index: 4, kind: output, shape index: {1}]  }
   0x1   :  { %12 = vsyncpa [#allocation8], 0 }
   0x2   :  { %13 = vsyncpa [#allocation6], 0 }
   0x3   :  { %14 = vsyncpa [#allocation11], 0  ;;  %s19_s17 = sshll.u32 %s330_s1, 4  ;;  %s270_s18 = smov [#allocation4]   ;;  %s20_s17 = int_to_ptr.hbm [resolvable:$true] %s19_s17 }
   0x4   :  { %s21_s19 = sshll.u32 %s270_s18, 4  ;;  %s32_s22 = sshll.u32 %s331_s2, 4  ;;  %s22_s19 = int_to_ptr.vmem [resolvable:$true] %s21_s19  ;;  %s33_s22 = int_to_ptr.hbm [resolvable:$true] %s32_s22 }
   0x5   :  { %s271_s23 = smov 128   ;;  %s272_s24 = smov 8  }
   0x6   :  { %27 = dma.hbm_to_vmem [thread:$0]  %s20_s17, 256, %s22_s19, [#allocation5], %s271_s23, %s271_s23, %s272_s24  }
   0x7   :  { %s273_s25 = smov [#allocation7]  }
   0x8   :  { %s34_s26 = sshll.u32 %s273_s25, 4  ;;  %s35_s26 = int_to_ptr.vmem [resolvable:$true] %s34_s26 }
   0x9   :  { %40 = dma.hbm_to_vmem [thread:$0]  %s33_s22, 256, %s35_s26, [#allocation8], %s271_s23, %s271_s23, %s272_s24  }
   0xa   :  { %262 = dma.done.wait [#allocation5], 256  }
   0xb   :  { %263 = vsyncadd [#allocation5], 4294967040 }
   0xc   :  { %264 = dma.done.wait [#allocation8], 256  }
   0xd   :  { %265 = vsyncadd [#allocation8], 4294967040  ;;  %v50_v0 = vlaneseq  ;;  %s63_s27 = smul.u32 2654435769, %s329_s0  ;;  %v107_v44 = vld [vmem:[#allocation4] sm:$0xff]  ;;  %v113_v45 = vld [vmem:[#allocation7] sm:$0xff] }
   0xe   :  { %v274_v47 = vmov 0.0   ;;  %v108_v49 = vld [vmem:[#allocation4 + $0x8] sm:$0xff]  ;;  %v114_v50 = vld [vmem:[#allocation7 + $0x8] sm:$0xff]  ;;  %s275_s0 = smov [#allocation9]   ;;  %s125_s5 = sshll.u32 %s332_s3, 4  ;;  %s126_s5 = int_to_ptr.hbm [resolvable:$true] %s125_s5 }
   0xf   :  { %v51_v1 = vshrl.u32 %v50_v0, 7  ;;  %v57_v2 = vand.u32 127, %v50_v0  ;;  %v64_v5 = vstv %s63_s27  ;;  %s123_s28 = sshll.u32 %s275_s0, 4  ;;  %s276_s6 = smov [#allocation10]   ;;  %s124_s28 = int_to_ptr.vmem [resolvable:$true] %s123_s28 }
  0x10   :  { %s136_s7 = sshll.u32 %s276_s6, 4  ;;  %s138_s10 = sshll.u32 %s333_s4, 4  ;;  %s137_s7 = int_to_ptr.vmem [resolvable:$true] %s136_s7  ;;  %s139_s10 = int_to_ptr.hbm [resolvable:$true] %s138_s10 }
  0x11   :  { %v58_v3 = vmul.u32 128, %v51_v1  ;;  %v52_v4 = vadd.s32 8, %v51_v1 }
  0x13   :  { %v60_v6 = vadd.s32 %v58_v3, %v57_v2  ;;  %v59_v7 = vmul.u32 128, %v52_v4 }
  0x15   :  { %v65_v8 = vxor.u32 %v64_v5, %v60_v6  ;;  %v61_v9 = vadd.s32 %v59_v7, %v57_v2 }
  0x17   :  { %v67_v10 = vshrl.u32 %v65_v8, 16  ;;  %v66_v11 = vxor.u32 %v64_v5, %v61_v9 }
  0x19   :  { %v69_v12 = vxor.u32 %v67_v10, %v65_v8  ;;  %v68_v13 = vshrl.u32 %v66_v11, 16 }
  0x1b   :  { %v71_v14 = vmul.u32 2146121005, %v69_v12  ;;  %v70_v15 = vxor.u32 %v68_v13, %v66_v11 }
  0x1d   :  { %v73_v16 = vshrl.u32 %v71_v14, 15  ;;  %v72_v17 = vmul.u32 2146121005, %v70_v15 }
  0x1f   :  { %v75_v18 = vxor.u32 %v73_v16, %v71_v14  ;;  %v74_v19 = vshrl.u32 %v72_v17, 15 }
  0x21   :  { %v77_v20 = vmul.u32 2221713035, %v75_v18  ;;  %v76_v21 = vxor.u32 %v74_v19, %v72_v17 }
  0x23   :  { %v79_v22 = vshrl.u32 %v77_v20, 16  ;;  %v78_v23 = vmul.u32 2221713035, %v76_v21 }
  0x25   :  { %v81_v24 = vxor.u32 %v79_v22, %v77_v20  ;;  %v80_v25 = vshrl.u32 %v78_v23, 16 }
  0x27   :  { %v83_v26 = vshrl.u32 %v81_v24, 16  ;;  %v82_v27 = vxor.u32 %v80_v25, %v78_v23 }
  0x29   :  { %v85_v28 = vxor.u32 %v83_v26, %v81_v24  ;;  %v84_v29 = vshrl.u32 %v82_v27, 16 }
  0x2b   :  { %v87_v30 = vmul.u32 2146121005, %v85_v28  ;;  %v86_v31 = vxor.u32 %v84_v29, %v82_v27 }
  0x2d   :  { %v89_v32 = vshrl.u32 %v87_v30, 15  ;;  %v88_v33 = vmul.u32 2146121005, %v86_v31 }
  0x2f   :  { %v91_v34 = vxor.u32 %v89_v32, %v87_v30  ;;  %v90_v35 = vshrl.u32 %v88_v33, 15 }
  0x31   :  { %v93_v36 = vmul.u32 2221713035, %v91_v34  ;;  %v92_v37 = vxor.u32 %v90_v35, %v88_v33 }
  0x33   :  { %v95_v38 = vshrl.u32 %v93_v36, 16  ;;  %v94_v39 = vmul.u32 2221713035, %v92_v37 }
  0x35   :  { %v97_v40 = vxor.u32 %v95_v38, %v93_v36  ;;  %v96_v41 = vshrl.u32 %v94_v39, 16 }
  0x37   :  { %v157_v42 = vxor.u32 2147483648, %v97_v40  ;;  %v98_v43 = vxor.u32 %v96_v41, %v94_v39 }
  0x39   :  { %vm101_vm0 = vcmp.ge.s32.totalorder %v157_v42, 3435973836  ;;  %v158_v46 = vxor.u32 2147483648, %v98_v43 }
  0x3a   :  { %v105_v48 = vsel %vm101_vm0, 1.4285715, %v274_v47 }
  0x3b   :  { %v109_v51 = vmul.f32 %v107_v44, %v105_v48  ;;  %vm104_vm1 = vcmp.ge.s32.totalorder %v158_v46, 3435973836  ;;  %v115_v52 = vmul.f32 %v113_v45, %v105_v48 }
  0x3c   :  { %v106_v53 = vsel %vm104_vm1, 1.4285715, %v274_v47 }
  0x3d   :  { %111 = vst [vmem:[#allocation9] sm:$0xff] %v109_v51  ;;  %v110_v54 = vmul.f32 %v108_v49, %v106_v53  ;;  %v116_v55 = vmul.f32 %v114_v50, %v106_v53 }
  0x3e   :  { %117 = vst [vmem:[#allocation10] sm:$0xff] %v115_v52 }
  0x3f   :  { %112 = vst [vmem:[#allocation9 + $0x8] sm:$0xff] %v110_v54 }
  0x40   :  { %118 = vst [vmem:[#allocation10 + $0x8] sm:$0xff] %v116_v55  ;;  %131 = dma.vmem_to_hbm [thread:$0]  %s124_s28, 256, %s126_s5, [#allocation6], %s271_s23, %s271_s23, %s272_s24  }
  0x41   :  { %144 = dma.vmem_to_hbm [thread:$0]  %s137_s7, 256, %s139_s10, [#allocation11], %s271_s23, %s271_s23, %s272_s24  }
  0x42   :  { %266 = dma.done.wait [#allocation6], 256  }
  0x43   :  { %267 = vsyncadd [#allocation6], 4294967040 }
  0x44   :  { %268 = dma.done.wait [#allocation11], 256  }
  0x45   :  { %269 = vsyncadd [#allocation11], 4294967040 }
  0x46   :  { %153 = vsyncpa [#allocation5], 1 }
  0x47   :  { %154 = vsyncpa [#allocation8], 1 }
  0x48   :  { %155 = vsyncpa [#allocation6], 1 }
  0x49   :  { %156 = vsyncpa [#allocation11], 1 }

</bundles_post_ra>
